<compile_context>
chip_gen: v5e
topology: v5e:2x2
jax: 0.10.0
libtpu: 0.0.40
codegen_flags: <defaults>
</compile_context>

<pallas_src>
import functools

import jax
import jax.numpy as jnp
from jax.experimental import pallas as pl
from jax.experimental.pallas import tpu as pltpu


def _round_up(x, m):
    return ((x + m - 1) // m) * m


def _embed_kernel(nf,
                  ids_ref,        # (1, NF+2, tile) int32  -- per-tile id block
                  word_tab_ref,   # (Vw, Ew)  VMEM-resident
                  feat_tab_ref,   # (Vf, Ef)  VMEM-resident
                  ans_tab_ref,    # (Va, Ea)  VMEM-resident
                  out_ref):       # (tile, Ew + NF*Ef + Ea)
    ids = ids_ref[0]              # (NF+2, tile) int32

    def gather(tab_ref, row_ids):
        tab = tab_ref[...]                                   # (V, E)
        v = tab.shape[0]
        t = row_ids.shape[0]
        onehot = (row_ids[:, None] ==
                  jax.lax.broadcasted_iota(jnp.int32, (t, v), 1)
                  ).astype(tab.dtype)                         # (tile, V)
        # One-hot row selection on the MXU (exact: single nonzero per row).
        return jnp.dot(onehot, tab, preferred_element_type=jnp.float32)

    parts = [gather(word_tab_ref, ids[0])]
    for f in range(nf):                                       # dict order
        parts.append(gather(feat_tab_ref, ids[1 + f]))
    parts.append(gather(ans_tab_ref, ids[1 + nf]))

    # Fused channel concat + single lane-dense writeback.
    out_ref[...] = jnp.concatenate(parts, axis=-1).astype(out_ref.dtype)


def embeddings_forward(input_ids, feature_tag_ids, answer_tag_ids,
                       word_tab, feat_tab, ans_tab, *, tile=128):
    """Forward pass of Embeddings: word + feature-tag(s) + answer-tag lookups,
    concatenated along the channel dim (== torch.cat(..., dim=2)).

    feature_tag_ids is the stacked (NF, B, S) array of feature_tag_ids_dict
    values in dict insertion order.
    """
    B, S = input_ids.shape
    NF = feature_tag_ids.shape[0]
    Vw, Ew = word_tab.shape
    Vf, Ef = feat_tab.shape
    Va, Ea = ans_tab.shape
    C = Ew + NF * Ef + Ea

    # Keep the tables' dtype end-to-end (no f32 upcast); promote if they differ.
    out_dtype = jnp.result_type(word_tab.dtype, feat_tab.dtype, ans_tab.dtype)
    word_tab = word_tab.astype(out_dtype)
    feat_tab = feat_tab.astype(out_dtype)
    ans_tab = ans_tab.astype(out_dtype)

    N = B * S
    # Don't over-tile tiny problems; keep the tile a multiple of 8 sublanes.
    tile = min(tile, _round_up(N, 8))
    tile = _round_up(max(tile, 8), 8)
    n_tiles = pl.cdiv(N, tile)
    n_pad = n_tiles * tile

    def flat_pad(ids2d):
        flat = ids2d.reshape(-1).astype(jnp.int32)
        # Padded tokens gather row 0; their output rows are sliced off below.
        return jnp.pad(flat, (0, n_pad - N))

    # Stack all id streams: 0 = word, 1..NF = feature tags, NF+1 = answer tag.
    # Shaped (n_tiles, NF+2, tile) so each grid step gets one lane-dense block.
    streams = ([flat_pad(input_ids)]
               + [flat_pad(feature_tag_ids[f]) for f in range(NF)]
               + [flat_pad(answer_tag_ids)])
    ids = jnp.stack(streams, axis=0).reshape(NF + 2, n_tiles, tile)
    ids = jnp.transpose(ids, (1, 0, 2))                       # (n_tiles, NF+2, tile)

    kernel = functools.partial(_embed_kernel, NF)

    itemsize = jnp.dtype(out_dtype).itemsize
    bytes_accessed = (ids.size * 4
                      + (word_tab.size + feat_tab.size + ans_tab.size) * itemsize
                      + n_pad * C * itemsize)
    flops = 2 * n_pad * (Vw * Ew + NF * Vf * Ef + Va * Ea)

    out = pl.pallas_call(
        kernel,
        grid_spec=pltpu.PrefetchScalarGridSpec(
            num_scalar_prefetch=0,
            grid=(n_tiles,),
            in_specs=[
                # per-tile stacked ids
                pl.BlockSpec((1, NF + 2, tile), lambda i: (i, 0, 0)),
                # VMEM-resident tables (constant index_map -> fetched once)
                pl.BlockSpec((Vw, Ew), lambda i: (0, 0)),
                pl.BlockSpec((Vf, Ef), lambda i: (0, 0)),
                pl.BlockSpec((Va, Ea), lambda i: (0, 0)),
            ],
            out_specs=pl.BlockSpec((tile, C), lambda i: (i, 0)),
        ),
        out_shape=jax.ShapeDtypeStruct((n_pad, C), out_dtype),
        compiler_params=pltpu.CompilerParams(
            dimension_semantics=("parallel",)),   # token tiles are independent
        cost_estimate=pl.CostEstimate(
            flops=flops, transcendentals=0, bytes_accessed=bytes_accessed),
    )(ids, word_tab, feat_tab, ans_tab)

    return out[:N].reshape(B, S, C)


if __name__ == "__main__":
    key = jax.random.PRNGKey(0)
    B, S = 2, 8

    # config (synthetic, small): shapes implied by Embeddings.__init__
    vocab_size, embedding_size, pad_token_id = 50, 32, 0
    feature_tag_vocab_size, feature_tag_embedding_size = 20, 16
    answer_tag_vocab_size, answer_tag_embedding_size = 4, 16
    NF = 4  # pos_tag, ner_tag, dep_tag, cas_tag entries of feature_tag_ids_dict

    k1, k2, k3, k4, k5, k6 = jax.random.split(key, 6)
    word_tab = jax.random.normal(k1, (vocab_size, embedding_size), jnp.float32)
    # nn.Embedding(padding_idx=...) zeros the padding row at init; the kernel
    # itself has no padding_idx semantics (only affects init / backward).
    word_tab = word_tab.at[pad_token_id].set(0.0)
    feat_tab = jax.random.normal(
        k2, (feature_tag_vocab_size, feature_tag_embedding_size), jnp.float32)
    ans_tab = jax.random.normal(
        k3, (answer_tag_vocab_size, answer_tag_embedding_size), jnp.float32)

    input_ids = jax.random.randint(k4, (B, S), 0, vocab_size, jnp.int32)
    feature_tag_ids = jax.random.randint(
        k5, (NF, B, S), 0, feature_tag_vocab_size, jnp.int32)
    answer_tag_ids = jax.random.randint(
        k6, (B, S), 0, answer_tag_vocab_size, jnp.int32)

    out = embeddings_forward(input_ids, feature_tag_ids, answer_tag_ids,
                             word_tab, feat_tab, ans_tab)
    out = jax.block_until_ready(out)

    # pure-JAX reference (gather + concat along dim=2), matches torch semantics
    ref = jnp.concatenate(
        [word_tab[input_ids]]
        + [feat_tab[feature_tag_ids[f]] for f in range(NF)]
        + [ans_tab[answer_tag_ids]],
        axis=2)

    expected_E = (embedding_size + NF * feature_tag_embedding_size
                  + answer_tag_embedding_size)
    assert out.shape == (B, S, expected_E), out.shape
    assert jnp.allclose(out, ref, atol=1e-6), "mismatch vs reference"
    print("KERNEL_OK")
</pallas_src>

<mosaic_0001>
module attributes {stable_mosaic.version = 11 : i64} {
  func.func @_embed_kernel(%arg0: i32, %arg1: memref<1x6x16xi32, #tpu.memory_space<vmem>>, %arg2: memref<50x32xf32, #tpu.memory_space<vmem>>, %arg3: memref<20x16xf32, #tpu.memory_space<vmem>>, %arg4: memref<4x16xf32, #tpu.memory_space<vmem>>, %arg5: memref<16x112xf32, #tpu.memory_space<vmem>>) attributes {dimension_semantics = [#tpu.dimension_semantics<parallel>], iteration_bounds = array<i64: 1>, scalar_prefetch = 0 : i64, scratch_operands = 0 : i64, tpu.core_type = #tpu.core_type<tc>, window_params = [{transform_indices = @transform_0, window_bounds = array<i64: 1, 6, 16>}, {pipeline_mode = #tpu.pipeline_mode<synchronous>, transform_indices = @transform_1, window_bounds = array<i64: 50, 32>}, {pipeline_mode = #tpu.pipeline_mode<synchronous>, transform_indices = @transform_2, window_bounds = array<i64: 20, 16>}, {pipeline_mode = #tpu.pipeline_mode<synchronous>, transform_indices = @transform_3, window_bounds = array<i64: 4, 16>}, {transform_indices = @transform_4, window_bounds = array<i64: 16, 112>}]} {
    %c0 = arith.constant 0 : index
    %c0_0 = arith.constant 0 : index
    %c0_1 = arith.constant 0 : index
    %0 = vector.load %arg1[%c0, %c0_0, %c0_1] : memref<1x6x16xi32, #tpu.memory_space<vmem>>, vector<1x6x16xi32>
    %1 = vector.shape_cast %0 : vector<1x6x16xi32> to vector<6x16xi32>
    %2 = vector.extract_strided_slice %1 {offsets = [0, 0], sizes = [1, 16], strides = [1, 1]} : vector<6x16xi32> to vector<1x16xi32>
    %3 = vector.shape_cast %2 : vector<1x16xi32> to vector<16xi32>
    %c0_2 = arith.constant 0 : index
    %c0_3 = arith.constant 0 : index
    %4 = vector.load %arg2[%c0_2, %c0_3] : memref<50x32xf32, #tpu.memory_space<vmem>>, vector<50x32xf32>
    %5 = vector.shape_cast %3 : vector<16xi32> to vector<16x1xi32>
    %6 = tpu.iota {dimensions = array<i32: 1>} : vector<16x50xi32>
    %7 = vector.broadcast %5 : vector<16x1xi32> to vector<16x50xi32>
    %8 = arith.cmpi eq, %7, %6 : vector<16x50xi32>
    %9 = arith.extui %8 : vector<16x50xi1> to vector<16x50xi32>
    %10 = arith.sitofp %9 : vector<16x50xi32> to vector<16x50xf32>
    %cst = arith.constant dense<0.000000e+00> : vector<16x32xf32>
    %11 = tpu.matmul %10, %4, %cst {dimension_numbers = #tpu.dot_dimension_numbers<[1], [0], [0], [1], [0, 0, 1, 1], [], []>} : vector<16x50xf32>, vector<50x32xf32>, vector<16x32xf32> -> vector<16x32xf32>
    %12 = vector.extract_strided_slice %1 {offsets = [1, 0], sizes = [1, 16], strides = [1, 1]} : vector<6x16xi32> to vector<1x16xi32>
    %13 = vector.shape_cast %12 : vector<1x16xi32> to vector<16xi32>
    %c0_4 = arith.constant 0 : index
    %c0_5 = arith.constant 0 : index
    %14 = vector.load %arg3[%c0_4, %c0_5] : memref<20x16xf32, #tpu.memory_space<vmem>>, vector<20x16xf32>
    %15 = vector.shape_cast %13 : vector<16xi32> to vector<16x1xi32>
    %16 = tpu.iota {dimensions = array<i32: 1>} : vector<16x20xi32>
    %17 = vector.broadcast %15 : vector<16x1xi32> to vector<16x20xi32>
    %18 = arith.cmpi eq, %17, %16 : vector<16x20xi32>
    %19 = arith.extui %18 : vector<16x20xi1> to vector<16x20xi32>
    %20 = arith.sitofp %19 : vector<16x20xi32> to vector<16x20xf32>
    %cst_6 = arith.constant dense<0.000000e+00> : vector<16x16xf32>
    %21 = tpu.matmul %20, %14, %cst_6 {dimension_numbers = #tpu.dot_dimension_numbers<[1], [0], [0], [1], [0, 0, 1, 1], [], []>} : vector<16x20xf32>, vector<20x16xf32>, vector<16x16xf32> -> vector<16x16xf32>
    %22 = vector.extract_strided_slice %1 {offsets = [2, 0], sizes = [1, 16], strides = [1, 1]} : vector<6x16xi32> to vector<1x16xi32>
    %23 = vector.shape_cast %22 : vector<1x16xi32> to vector<16xi32>
    %c0_7 = arith.constant 0 : index
    %c0_8 = arith.constant 0 : index
    %24 = vector.load %arg3[%c0_7, %c0_8] : memref<20x16xf32, #tpu.memory_space<vmem>>, vector<20x16xf32>
    %25 = vector.shape_cast %23 : vector<16xi32> to vector<16x1xi32>
    %26 = tpu.iota {dimensions = array<i32: 1>} : vector<16x20xi32>
    %27 = vector.broadcast %25 : vector<16x1xi32> to vector<16x20xi32>
    %28 = arith.cmpi eq, %27, %26 : vector<16x20xi32>
    %29 = arith.extui %28 : vector<16x20xi1> to vector<16x20xi32>
    %30 = arith.sitofp %29 : vector<16x20xi32> to vector<16x20xf32>
    %cst_9 = arith.constant dense<0.000000e+00> : vector<16x16xf32>
    %31 = tpu.matmul %30, %24, %cst_9 {dimension_numbers = #tpu.dot_dimension_numbers<[1], [0], [0], [1], [0, 0, 1, 1], [], []>} : vector<16x20xf32>, vector<20x16xf32>, vector<16x16xf32> -> vector<16x16xf32>
    %32 = vector.extract_strided_slice %1 {offsets = [3, 0], sizes = [1, 16], strides = [1, 1]} : vector<6x16xi32> to vector<1x16xi32>
    %33 = vector.shape_cast %32 : vector<1x16xi32> to vector<16xi32>
    %c0_10 = arith.constant 0 : index
    %c0_11 = arith.constant 0 : index
    %34 = vector.load %arg3[%c0_10, %c0_11] : memref<20x16xf32, #tpu.memory_space<vmem>>, vector<20x16xf32>
    %35 = vector.shape_cast %33 : vector<16xi32> to vector<16x1xi32>
    %36 = tpu.iota {dimensions = array<i32: 1>} : vector<16x20xi32>
    %37 = vector.broadcast %35 : vector<16x1xi32> to vector<16x20xi32>
    %38 = arith.cmpi eq, %37, %36 : vector<16x20xi32>
    %39 = arith.extui %38 : vector<16x20xi1> to vector<16x20xi32>
    %40 = arith.sitofp %39 : vector<16x20xi32> to vector<16x20xf32>
    %cst_12 = arith.constant dense<0.000000e+00> : vector<16x16xf32>
    %41 = tpu.matmul %40, %34, %cst_12 {dimension_numbers = #tpu.dot_dimension_numbers<[1], [0], [0], [1], [0, 0, 1, 1], [], []>} : vector<16x20xf32>, vector<20x16xf32>, vector<16x16xf32> -> vector<16x16xf32>
    %42 = vector.extract_strided_slice %1 {offsets = [4, 0], sizes = [1, 16], strides = [1, 1]} : vector<6x16xi32> to vector<1x16xi32>
    %43 = vector.shape_cast %42 : vector<1x16xi32> to vector<16xi32>
    %c0_13 = arith.constant 0 : index
    %c0_14 = arith.constant 0 : index
    %44 = vector.load %arg3[%c0_13, %c0_14] : memref<20x16xf32, #tpu.memory_space<vmem>>, vector<20x16xf32>
    %45 = vector.shape_cast %43 : vector<16xi32> to vector<16x1xi32>
    %46 = tpu.iota {dimensions = array<i32: 1>} : vector<16x20xi32>
    %47 = vector.broadcast %45 : vector<16x1xi32> to vector<16x20xi32>
    %48 = arith.cmpi eq, %47, %46 : vector<16x20xi32>
    %49 = arith.extui %48 : vector<16x20xi1> to vector<16x20xi32>
    %50 = arith.sitofp %49 : vector<16x20xi32> to vector<16x20xf32>
    %cst_15 = arith.constant dense<0.000000e+00> : vector<16x16xf32>
    %51 = tpu.matmul %50, %44, %cst_15 {dimension_numbers = #tpu.dot_dimension_numbers<[1], [0], [0], [1], [0, 0, 1, 1], [], []>} : vector<16x20xf32>, vector<20x16xf32>, vector<16x16xf32> -> vector<16x16xf32>
    %52 = vector.extract_strided_slice %1 {offsets = [5, 0], sizes = [1, 16], strides = [1, 1]} : vector<6x16xi32> to vector<1x16xi32>
    %53 = vector.shape_cast %52 : vector<1x16xi32> to vector<16xi32>
    %c0_16 = arith.constant 0 : index
    %c0_17 = arith.constant 0 : index
    %54 = vector.load %arg4[%c0_16, %c0_17] : memref<4x16xf32, #tpu.memory_space<vmem>>, vector<4x16xf32>
    %55 = vector.shape_cast %53 : vector<16xi32> to vector<16x1xi32>
    %56 = tpu.iota {dimensions = array<i32: 1>} : vector<16x4xi32>
    %57 = vector.broadcast %55 : vector<16x1xi32> to vector<16x4xi32>
    %58 = arith.cmpi eq, %57, %56 : vector<16x4xi32>
    %59 = arith.extui %58 : vector<16x4xi1> to vector<16x4xi32>
    %60 = arith.sitofp %59 : vector<16x4xi32> to vector<16x4xf32>
    %cst_18 = arith.constant dense<0.000000e+00> : vector<16x16xf32>
    %61 = tpu.matmul %60, %54, %cst_18 {dimension_numbers = #tpu.dot_dimension_numbers<[1], [0], [0], [1], [0, 0, 1, 1], [], []>} : vector<16x4xf32>, vector<4x16xf32>, vector<16x16xf32> -> vector<16x16xf32>
    %62 = tpu.concatenate %11, %21, %31, %41, %51, %61 in 1 : vector<16x32xf32>, vector<16x16xf32>, vector<16x16xf32>, vector<16x16xf32>, vector<16x16xf32>, vector<16x16xf32> -> vector<16x112xf32>
    %c0_19 = arith.constant 0 : index
    %c0_20 = arith.constant 0 : index
    %63 = vector.load %arg5[%c0_19, %c0_20] : memref<16x112xf32, #tpu.memory_space<vmem>>, vector<16x112xf32>
    tpu.vector_store %arg5[%c0_19, %c0_20], %62 {strides = array<i32>} : memref<16x112xf32, #tpu.memory_space<vmem>>, vector<16x112xf32>,
    return
  }
  func.func @transform_0(%arg0: i32) -> (i32, i32, i32) {
    %c0_i32 = arith.constant 0 : i32
    %c0_i32_0 = arith.constant 0 : i32
    %c0_i32_1 = arith.constant 0 : i32
    return %arg0, %c0_i32, %c0_i32_0 : i32, i32, i32
  }
  func.func @transform_1(%arg0: i32) -> (i32, i32) {
    %c0_i32 = arith.constant 0 : i32
    %c0_i32_0 = arith.constant 0 : i32
    %c0_i32_1 = arith.constant 0 : i32
    return %c0_i32, %c0_i32_0 : i32, i32
  }
  func.func @transform_2(%arg0: i32) -> (i32, i32) {
    %c0_i32 = arith.constant 0 : i32
    %c0_i32_0 = arith.constant 0 : i32
    %c0_i32_1 = arith.constant 0 : i32
    return %c0_i32, %c0_i32_0 : i32, i32
  }
  func.func @transform_3(%arg0: i32) -> (i32, i32) {
    %c0_i32 = arith.constant 0 : i32
    %c0_i32_0 = arith.constant 0 : i32
    %c0_i32_1 = arith.constant 0 : i32
    return %c0_i32, %c0_i32_0 : i32, i32
  }
  func.func @transform_4(%arg0: i32) -> (i32, i32) {
    %c0_i32 = arith.constant 0 : i32
    %c0_i32_0 = arith.constant 0 : i32
    return %arg0, %c0_i32 : i32, i32
  }
}

</mosaic_0001>

<bundles_post_ra>
// kernel: tpu_custom_call.1
= control target key start
LH: loop header
LB: loop body
LE: loop exit
PB: predicated region body
PF: predicated region fallthrough
CT: control target
= control target key end

     0   :  { %v27_v0 = vlaneseq  ;;  %s583_s0 = inlined_call_operand.vmem [shape: s32[1,6,16], index: 0, kind: input, shape index: {}]   ;;  %s584_s1 = inlined_call_operand.vmem [shape: f32[50,32], index: 1, kind: input, shape index: {}]   ;;  %s585_s2 = inlined_call_operand.vmem [shape: f32[20,16], index: 2, kind: input, shape index: {}]   ;;  %s586_s3 = inlined_call_operand.vmem [shape: f32[4,16], index: 3, kind: input, shape index: {}]   ;;  %s587_s4 = inlined_call_operand.hbm [shape: f32[16,112], index: 4, kind: output, shape index: {}]  }
   0x1   :  { %9 = vsyncpa [#allocation3], 0  ;;  %v18_v3 = vld [vmem:[%s583_s0] sm:$0x3f]  ;;  %v83_v7 = vld [vmem:[%s585_s2 + $0x10] sm:$0xf] }
   0x2   :  { %v28_v1 = vshrl.u32 %v27_v0, 7  ;;  %v137_v4 = vperm.slane %v18_v3, 2  ;;  %v185_v5 = vperm.slane %v18_v3, 3  ;;  %v282_v6 = vperm.slane %v18_v3, 5  ;;  %v82_v8 = vld [vmem:[%s585_s2 + $0x8] sm:$0xff]  ;;  %v81_v12 = vld [vmem:[%s585_s2] sm:$0xff] }
   0x3   :  { %vm110_vm0 = vcmask 1043456   ;;  %v84_v9 = vperm.slane %v18_v3, 1  ;;  %v233_v10 = vperm.slane %v18_v3, 4  ;;  %v26_v11 = vperm.slane %v18_v3, 0  ;;  %v25_v13 = vld [vmem:[%s584_s1 + $0x30] sm:$0x3] }
   0x4   :  { %452 = vset.pattern.permute.xlu0 %v28_v1  ;;  %v35_v2 = vadd.s32 8, %v28_v1  ;;  %456 = vset.pattern.permute.xlu2 %v28_v1  ;;  %vm54_vm1 = vcmask 1041408   ;;  %v24_v14 = vld [vmem:[%s584_s1 + $0x28] sm:$0xff]  ;;  %v23_v15 = vld [vmem:[%s584_s1 + $0x20] sm:$0xff]  ;;  %v22_v18 = vld [vmem:[%s584_s1 + $0x18] sm:$0xff]  ;;  %v40_v23 = vand.u32 127, %v27_v0 }
   0x5   :  { %422 = vmatpush.msk.msra.mxu2 %vm110_vm0, %v83_v7  ;;  %440 = vmatpush.msk.msra.mxu3 %vm110_vm0, %v83_v7  ;;  %v281_v16 = vld [vmem:[%s586_s3] sm:$0xf]  ;;  %v21_v19 = vld [vmem:[%s584_s1 + $0x10] sm:$0xff]  ;;  %v20_v20 = vld [vmem:[%s584_s1 + $0x8] sm:$0xff]  ;;  %vm103_vm2 = vcmask 162816   ;;  %v486_v25 = vmov 0.0  }
   0x6   :  { %454 = vset.pattern.permute.xlu1 %v35_v2  ;;  %417 = vmatpush.msk.msra.mxu1 %vm110_vm0, %v83_v7  ;;  %v19_v21 = vld [vmem:[%s584_s1] sm:$0xff]  ;;  %vm301_vm6 = vcmask 31744   ;;  %vm47_vm9 = vcmask 408576   ;;  %s487_s1 = smov 48   ;;  %s488_s10 = smov 32  }
   0x7   :  { %176 = vmatpush.msra.mxu2 %v82_v8  ;;  %441 = vmatpush.msra.mxu3 %v82_v8  ;;  %s489_s11 = smov 80   ;;  %s490_s12 = smov 64  }
   0x8   :  { %128 = vmatpush.msra.mxu1 %v82_v8  ;;  %412 = vmatpush.msk.msra.mxu0 %vm54_vm1, %v25_v13  ;;  %s491_s13 = smov 96   ;;  %vm374_vm1 = vcmask 261120   ;;  %s492_s14 = smov [#allocation2]  }
   0x9   :  { %177 = vmatpush.msra.mxu2 %v81_v12  ;;  %442 = vmatpush.msra.mxu3 %v81_v12  ;;  %s396_s15 = sshll.u32 %s492_s14, 4  ;;  %s398_s18 = sshll.u32 %s587_s4, 4  ;;  %s397_s15 = int_to_ptr.vmem [resolvable:$true] %s396_s15  ;;  %s399_s18 = int_to_ptr.hbm [resolvable:$true] %s398_s18 }
   0xa   :  { %129 = vmatpush.msra.mxu1 %v81_v12  ;;  %68 = vmatpush.msra.mxu0 %v24_v14  ;;  %s493_s19 = smov 128   ;;  %s494_s20 = smov 8  }
   0xb   :  { %427 = vmatpush.msk.msrb.mxu3 %vm110_vm0, %v83_v7  ;;  %437 = vmatpush.msk.msrb.mxu2 %vm110_vm0, %v281_v16 }
   0xc   :  { %142 = vperm.xlu0 %452, %v137_v4   ;;  %190 = vperm.xlu2 %456, %v185_v5  }
   0xd   :  { %432 = vmatpush.msk.msrb.mxu1 %vm110_vm0, %v83_v7  ;;  %224 = vmatpush.msrb.mxu3 %v82_v8 }
   0xe   :  { %148 = vperm.xlu1 %454, %v137_v4   ;;  %69 = vmatpush.msra.mxu0 %v23_v15 }
   0xf   :  { %272 = vmatpush.msrb.mxu1 %v82_v8  ;;  %225 = vmatpush.msrb.mxu3 %v81_v12 }
  0x10   :  { %70 = vmatpush.msra.mxu0 %v22_v18 }
  0x11   :  { %273 = vmatpush.msrb.mxu1 %v81_v12 }
  0x12   :  { %71 = vmatpush.msra.mxu0 %v21_v19 }
  0x14   :  { %453 = vset.pattern.permute.xlu0 %v35_v2  ;;  %287 = vperm.xlu2 %456, %v282_v6  }
  0x15   :  { %72 = vmatpush.msra.mxu0 %v20_v20 }
  0x16   :  { %455 = vset.pattern.permute.xlu1 %v28_v1 }
  0x17   :  { %73 = vmatpush.msra.mxu0 %v19_v21 }
  0x1c   :  { %95 = vperm.xlu0 %453, %v84_v9   ;;  %457 = vset.pattern.permute.xlu2 %v35_v2 }
  0x1e   :  { %89 = vperm.xlu1 %455, %v84_v9  }
  0x24   :  { %293 = vperm.xlu0 %453, %v282_v6   ;;  %196 = vperm.xlu2 %457, %v185_v5  }
  0x26   :  { %238 = vperm.xlu1 %455, %v233_v10  }
  0x2c   :  { %37 = vperm.xlu0 %453, %v26_v11   ;;  %459 = vset.pattern.permute.xlu2 %v28_v1 }
  0x2e   :  { %458 = vset.pattern.permute.xlu1 %v35_v2 }
  0x34   :  { %31 = vperm.xlu2 %459, %v26_v11  }
  0x36   :  { %244 = vperm.xlu1 %458, %v233_v10  }
  0x66   :  { %v191_v17 = vpop.permute.xlu2 %190 }
  0x67   :  { %vm198_vm11 = vcmp.eq.s32.totalorder %v191_v17, %v40_v23 }
  0x68   :  { %v425_v38 = vsel %vm198_vm11, 1.0, %v486_v25 }
  0x6e   :  { %v288_v22 = vpop.permute.xlu2 %287 }
  0x6f   :  { %vm295_vm5 = vcmp.eq.s32.totalorder %v288_v22, %v40_v23 }
  0x70   :  { %v435_v32 = vsel %vm295_vm5, 1.0, %v486_v25  ;;  %vm383_vm5 = vcmask 654336  }
  0x7e   :  { %v143_v24 = vpop.permute.xlu0 %142  ;;  %v197_v28 = vpop.permute.xlu2 %196 }
  0x7f   :  { %vm150_vm3 = vcmp.eq.s32.totalorder %v143_v24, %v40_v23  ;;  %vm199_vm14 = vcmp.eq.s32.totalorder %v197_v28, %v40_v23 }
  0x80   :  { %v420_v26 = vsel %vm150_vm3, 1.0, %v486_v25  ;;  %v149_v27 = vpop.permute.xlu1 %148  ;;  %v426_v42 = vsel %vm199_vm14, 1.0, %v486_v25  ;;  %vm380_vm3 = vcmask 523264  }
  0x81   :  { %423 = vmatmul.msk.f32.vlgmr.msra.gmra.mxu2 %vm103_vm2, %v420_v26  ;;  %vm151_vm4 = vcmp.eq.s32.totalorder %v149_v27, %v40_v23 }
  0x82   :  { %v421_v29 = vsel %vm151_vm4, 1.0, %v486_v25  ;;  %vm386_vm4 = vcmask 785408  }
  0x89   :  { %424 = vmatmul.msk.f32.gmra.mxu2 %vm103_vm2, %v421_v29 }
  0x8e   :  { %v96_v30 = vpop.permute.xlu0 %95  ;;  %v32_v31 = vpop.permute.xlu2 %31 }
  0x8f   :  { %vm98_vm7 = vcmp.eq.s32.totalorder %v96_v30, %v40_v23  ;;  %vm41_vm8 = vcmp.eq.s32.totalorder %v32_v31, %v40_v23 }
  0x90   :  { %v416_v33 = vsel %vm98_vm7, 1.0, %v486_v25  ;;  %v90_v34 = vpop.permute.xlu1 %89  ;;  %v410_v35 = vsel %vm41_vm8, 1.0, %v486_v25 }
  0x91   :  { %vm97_vm10 = vcmp.eq.s32.totalorder %v90_v34, %v40_v23  ;;  %419 = vmatmul.msk.f32.vlgmr.msra.gmra.mxu3 %vm103_vm2, %v416_v33  ;;  %438 = vmatmul.msk.f32.vlgmr.msrb.gmra.mxu2 %vm301_vm6, %v435_v32 }
  0x92   :  { %v415_v36 = vsel %vm97_vm10, 1.0, %v486_v25  ;;  %413 = vmatmul.msk.f32.vlgmr.msra.gmra.mxu0 %vm47_vm9, %v410_v35 }
  0x93   :  { %418 = vmatmul.msk.f32.vlgmr.msra.gmra.mxu1 %vm103_vm2, %v415_v36 }
  0x96   :  { %v294_v37 = vpop.permute.xlu0 %293 }
  0x97   :  { %vm296_vm12 = vcmp.eq.s32.totalorder %v294_v37, %v40_v23 }
  0x98   :  { %v436_v39 = vsel %vm296_vm12, 1.0, %v486_v25  ;;  %v239_v40 = vpop.permute.xlu1 %238 }
  0x99   :  { %vm246_vm13 = vcmp.eq.s32.totalorder %v239_v40, %v40_v23  ;;  %428 = vmatmul.msk.f32.vlgmr.msrb.gmra.mxu3 %vm103_vm2, %v425_v38  ;;  %439 = vmatmul.msk.f32.gmra.mxu2 %vm301_vm6, %v436_v39  ;;  %vm389_vm6 = vcmask 916480  }
  0x9a   :  { %v430_v41 = vsel %vm246_vm13, 1.0, %v486_v25 }
  0x9b   :  { %433 = vmatmul.msk.f32.vlgmr.msrb.gmra.mxu1 %vm103_vm2, %v430_v41 }
  0x9e   :  { %v38_v43 = vpop.permute.xlu0 %37 }
  0x9f   :  { %vm42_vm15 = vcmp.eq.s32.totalorder %v38_v43, %v40_v23 }
  0xa0   :  { %v411_v44 = vsel %vm42_vm15, 1.0, %v486_v25 }
  0xa1   :  { %414 = vmatmul.msk.f32.gmra.mxu0 %vm47_vm9, %v411_v44  ;;  %429 = vmatmul.msk.f32.gmra.mxu3 %vm103_vm2, %v426_v42 }
  0xa8   :  { %v245_v45 = vpop.permute.xlu1 %244 }
  0xa9   :  { %vm247_vm0 = vcmp.eq.s32.totalorder %v245_v45, %v40_v23 }
  0xaa   :  { %v431_v46 = vsel %vm247_vm0, 1.0, %v486_v25 }
  0xab   :  { %434 = vmatmul.msk.f32.gmra.mxu1 %vm103_vm2, %v431_v46  ;;  %vm377_vm2 = vcmask 392192  }
 0x104   :  { %v179_v47 = vpop.f32.mrf.mxu2 }
 0x105   :  { %344 = vrot.lane.b32.xlu0 %v179_v47, %s487_s1 }
 0x10c   :  { %v182_v49 = vpop.f32.mrf.mxu2 }
 0x10f   :  { %v75_v59 = vpop.f32.mrf.mxu0 }
 0x110   :  { %v131_v48 = vpop.f32.mrf.mxu1 }
 0x111   :  { %336 = vrot.lane.b32.xlu1 %v131_v48, %s488_s10 }
 0x114   :  { %v134_v50 = vpop.f32.mrf.mxu3  ;;  %v328_v53 = vpop.f32.mrf.mxu2 }
 0x115   :  { %338 = vrot.lane.b32.xlu2 %v134_v50, %s488_s10 }
 0x118   :  { %v275_v51 = vpop.f32.mrf.mxu1 }
 0x119   :  { %360 = vrot.lane.b32.xlu1 %v275_v51, %s489_s11 }
 0x11c   :  { %v227_v52 = vpop.f32.mrf.mxu3  ;;  %v331_v55 = vpop.f32.mrf.mxu2 }
 0x11d   :  { %352 = vrot.lane.b32.xlu2 %v227_v52, %s490_s12 }
 0x11e   :  { %v78_v0 = vpop.f32.mrf.mxu0 }
 0x121   :  { %346 = vrot.lane.b32.xlu1 %v182_v49, %s487_s1 }
 0x124   :  { %v230_v54 = vpop.f32.mrf.mxu3 }
 0x125   :  { %354 = vrot.lane.b32.xlu0 %v230_v54, %s490_s12 }
 0x128   :  { %v278_v56 = vpop.f32.mrf.mxu1 }
 0x129   :  { %370 = vrot.lane.b32.xlu1 %v331_v55, %s491_s13  ;;  %362 = vrot.lane.b32.xlu2 %v278_v56, %s489_s11 }
 0x12d   :  { %368 = vrot.lane.b32.xlu0 %v328_v53, %s491_s13 }
 0x16f   :  { %v339_v58 = vpop.permute.xlu2 %338 }
 0x170   :  { %v376_v1 = vsel %vm374_vm1, %v78_v0, %v339_v58 }
 0x177   :  { %v345_v61 = vpop.permute.xlu0 %344  ;;  %v353_v62 = vpop.permute.xlu2 %352 }
 0x183   :  { %v337_v57 = vpop.permute.xlu1 %336  ;;  %v363_v6 = vpop.permute.xlu2 %362 }
 0x184   :  { %v375_v4 = vsel %vm374_vm1, %v75_v59, %v337_v57 }
 0x185   :  { %v378_v7 = vsel %vm377_vm2, %v375_v4, %v345_v61 }
 0x186   :  { %v381_v11 = vsel %vm380_vm3, %v378_v7, %v353_v62 }
 0x18b   :  { %v361_v60 = vpop.permute.xlu1 %360 }
 0x18c   :  { %v384_v12 = vsel %vm383_vm5, %v381_v11, %v361_v60 }
 0x193   :  { %v347_v63 = vpop.permute.xlu1 %346 }
 0x194   :  { %v379_v2 = vsel %vm377_vm2, %v376_v1, %v347_v63 }
 0x197   :  { %v355_v3 = vpop.permute.xlu0 %354 }
 0x198   :  { %v382_v5 = vsel %vm380_vm3, %v379_v2, %v355_v3 }
 0x199   :  { %v385_v8 = vsel %vm383_vm5, %v382_v5, %v363_v6 }
 0x19b   :  { %v371_v9 = vpop.permute.xlu1 %370 }
 0x19c   :  { %v388_v10 = vsel %vm386_vm4, %v385_v8, %v371_v9 }
 0x19d   :  { %391 = vst.msk [vmem:[#allocation2 + $0x8] sm:$0xff] %vm389_vm6, %v388_v10 }
 0x19f   :  { %v369_v13 = vpop.permute.xlu0 %368 }
 0x1a0   :  { %v387_v14 = vsel %vm386_vm4, %v384_v12, %v369_v13 }
 0x1a1   :  { %390 = vst.msk [vmem:[#allocation2] sm:$0xff] %vm389_vm6, %v387_v14 }
 0x1a2   :  { %404 = dma.vmem_to_hbm [thread:$0]  %s397_s15, 256, %s399_s18, [#allocation3], %s493_s19, %s493_s19, %s494_s20  }
 0x1a3   :  { %484 = dma.done.wait [#allocation3], 256  }
 0x1a4   :  { %485 = vsyncadd [#allocation3], 4294967040 }
 0x1a5   :  { %409 = vsyncpa [#allocation3], 1 }

</bundles_post_ra>
